<compile_context>
chip_gen: v7x
topology: tpu7x:2x2x1
jax: 0.10.0
libtpu: 0.0.40
codegen_flags: <defaults>
</compile_context>

<pallas_src>
import math

import jax
import jax.numpy as jnp
from jax.experimental import pallas as pl
from jax.experimental.pallas import tpu as pltpu


def _round_up(x, m):
    return ((x + m - 1) // m) * m


def _pad2d(a, rows, cols):
    return jnp.pad(a, ((0, rows - a.shape[0]), (0, cols - a.shape[1])))


def gcn_classifier_kernel(adj_ref, x_ref, w1_ref, b1_ref, w2t_ref, b2_ref,
                          out_ref, acc_ref):
    """Grid = (row_tiles, k_tiles).  acc_ref accumulates (adj @ x) for one
    row tile across the K axis; the last K step applies W1/b1/ReLU and the
    final Linear layer, then stores the lane-dense output tile."""
    k = pl.program_id(1)

    @pl.when(k == 0)
    def _():
        acc_ref[...] = jnp.zeros_like(acc_ref)

    # acc += adj_tile @ x_tile        (bf16 operands, f32 accumulation, MXU)
    acc_ref[...] += jnp.dot(adj_ref[...], x_ref[...],
                            preferred_element_type=jnp.float32)

    @pl.when(k == pl.num_programs(1) - 1)
    def _():
        ax = acc_ref[...].astype(jnp.bfloat16)
        # gc1: (adj @ x) @ W1 + b1, then ReLU           (MXU + VPU)
        h = jnp.dot(ax, w1_ref[...],
                    preferred_element_type=jnp.float32) + b1_ref[...]
        h = jnp.maximum(h, 0.0)
        # TODO(synk): F.dropout in training mode would need pltpu.prng_random_bits;
        # eval-mode dropout is the identity, which is what we implement here.
        # mlp: h @ W2^T + b2                            (MXU + VPU)
        out_ref[...] = (
            jnp.dot(h.astype(jnp.bfloat16), w2t_ref[...],
                    preferred_element_type=jnp.float32) + b2_ref[...]
        ).astype(out_ref.dtype)


def gcn_classifier_forward(x, adj, w1, b1, w2, b2, *, tm=256, tk=512):
    """x: [N, nembed] f32, adj: [N, N] f32, w1: [nembed, nhid], b1: [nhid],
    w2: [nclass, nhid] (PyTorch Linear layout), b2: [nclass] -> [N, nclass] f32.

    tm: row-tile size (multiple of 8), tk: K-tile size over adj columns
    (multiple of 128).  Defaults are sized so bf16 double-buffered tiles fit
    comfortably in v7x's 64 MiB VMEM as well as v5e/v6e."""
    n, nembed = x.shape
    nhid = w1.shape[1]
    nclass = w2.shape[0]

    # Lane-friendly padded feature dims (all multiples of 128).
    ep = _round_up(nembed, 128)
    hp = _round_up(nhid, 128)
    cp = _round_up(nclass, 128)   # lane-dense output -> unmasked vst

    # Clamp tiles to the (padded) problem size.
    tm = min(tm, _round_up(n, 8))
    tk = min(tk, _round_up(n, 128))
    assert tm % 8 == 0 and tk % 128 == 0
    n_rows = _round_up(n, tm)
    n_cols = _round_up(n, tk)

    bf16 = jnp.bfloat16
    adj_p = _pad2d(adj, n_rows, n_cols).astype(bf16)
    x_p = _pad2d(x, n_cols, ep).astype(bf16)
    w1_p = _pad2d(w1, ep, hp).astype(bf16)
    w2t_p = _pad2d(w2.T, hp, cp).astype(bf16)
    b1_p = jnp.pad(b1, (0, hp - nhid)).reshape(1, hp).astype(jnp.float32)
    b2_p = jnp.pad(b2, (0, cp - nclass)).reshape(1, cp).astype(jnp.float32)

    grid = (n_rows // tm, n_cols // tk)

    cost = pl.CostEstimate(
        flops=2 * n * n * nembed + 2 * n * nembed * nhid + 2 * n * nhid * nclass,
        transcendentals=0,
        bytes_accessed=(adj_p.size * 2 + x_p.size * 2 + w1_p.size * 2
                        + w2t_p.size * 2 + b1_p.size * 4 + b2_p.size * 4
                        + n_rows * cp * 4),
    )

    out_p = pl.pallas_call(
        gcn_classifier_kernel,
        out_shape=jax.ShapeDtypeStruct((n_rows, cp), jnp.float32),
        grid_spec=pltpu.PrefetchScalarGridSpec(
            num_scalar_prefetch=0,
            grid=grid,
            in_specs=[
                pl.BlockSpec((tm, tk), lambda i, k: (i, k)),   # adj tile
                pl.BlockSpec((tk, ep), lambda i, k: (k, 0)),   # x tile
                pl.BlockSpec((ep, hp), lambda i, k: (0, 0)),   # W1 (VMEM-resident)
                pl.BlockSpec((1, hp), lambda i, k: (0, 0)),    # b1
                pl.BlockSpec((hp, cp), lambda i, k: (0, 0)),   # W2^T (VMEM-resident)
                pl.BlockSpec((1, cp), lambda i, k: (0, 0)),    # b2
            ],
            out_specs=pl.BlockSpec((tm, cp), lambda i, k: (i, 0)),
            scratch_shapes=[pltpu.VMEM((tm, ep), jnp.float32)],  # f32 accumulator
        ),
        compiler_params=pltpu.CompilerParams(
            dimension_semantics=("parallel", "arbitrary"),
            # Raise v5e's 16 MiB default scoped VMEM; 32 MiB is safe on all gens.
            vmem_limit_bytes=32 * 1024 * 1024,
        ),
        cost_estimate=cost,
    )(adj_p, x_p, w1_p, b1_p, w2t_p, b2_p)

    # Strip row / class padding.
    return out_p[:n, :nclass]


def reference_forward_f32(x, adj, w1, b1, w2, b2):
    h = jnp.maximum(adj @ (x @ w1) + b1, 0.0)
    return h @ w2.T + b2


def reference_forward_matched(x, adj, w1, b1, w2, b2):
    # Same re-association and bf16-operand / f32-accumulate strategy as the kernel.
    bf = jnp.bfloat16
    ax = jnp.dot(adj.astype(bf), x.astype(bf), preferred_element_type=jnp.float32)
    h = jnp.dot(ax.astype(bf), w1.astype(bf),
                preferred_element_type=jnp.float32) + b1
    h = jnp.maximum(h, 0.0)
    return jnp.dot(h.astype(bf), w2.T.astype(bf),
                   preferred_element_type=jnp.float32) + b2


if __name__ == "__main__":
    # Small shapes consistent with the module; N chosen so the demo actually
    # exercises the multi-tile grid (row-parallel + K accumulation).
    N, nembed, nhid, nclass = 256, 32, 64, 8

    key = jax.random.PRNGKey(0)
    kx, kadj, kw1, kb1, kw2, kb2 = jax.random.split(key, 6)

    # Inputs.
    x = jax.random.normal(kx, (N, nembed), dtype=jnp.float32)
    # Symmetric row-normalized dense adjacency with self loops.
    a = (jax.random.uniform(kadj, (N, N)) > 0.7).astype(jnp.float32)
    a = jnp.maximum(a, a.T) + jnp.eye(N, dtype=jnp.float32)
    adj = a / jnp.sum(a, axis=1, keepdims=True)

    # Parameters (deterministic init mirroring the module's __init__ shapes).
    stdv = 1.0 / math.sqrt(nhid)
    w1 = jax.random.uniform(kw1, (nembed, nhid), minval=-stdv, maxval=stdv,
                            dtype=jnp.float32)
    b1 = jax.random.uniform(kb1, (nhid,), minval=-stdv, maxval=stdv,
                            dtype=jnp.float32)
    w2 = 0.05 * jax.random.normal(kw2, (nclass, nhid), dtype=jnp.float32)
    b2 = jax.random.uniform(kb2, (nclass,), minval=-stdv, maxval=stdv,
                            dtype=jnp.float32)

    # Small tiles here so grid = (2, 2): 2 row tiles x 2 K tiles.
    out = gcn_classifier_forward(x, adj, w1, b1, w2, b2, tm=128, tk=128)
    out = jax.block_until_ready(out)

    assert out.shape == (N, nclass)

    ref_matched = reference_forward_matched(x, adj, w1, b1, w2, b2)
    ref_f32 = reference_forward_f32(x, adj, w1, b1, w2, b2)

    assert jnp.allclose(out, ref_matched, atol=1e-2, rtol=1e-2), \
        "mismatch vs bf16-matched reference"
    assert jnp.allclose(out, ref_f32, atol=5e-2, rtol=5e-2), \
        "mismatch vs f32 reference"

    print("KERNEL_OK")
</pallas_src>

<mosaic_0001>
module attributes {stable_mosaic.version = 11 : i64} {
  func.func @gcn_classifier_kernel(%arg0: i32, %arg1: i32, %arg2: memref<128x128xbf16, #tpu.memory_space<vmem>>, %arg3: memref<128x128xbf16, #tpu.memory_space<vmem>>, %arg4: memref<128x128xbf16, #tpu.memory_space<vmem>>, %arg5: memref<1x128xf32, #tpu.memory_space<vmem>>, %arg6: memref<128x128xbf16, #tpu.memory_space<vmem>>, %arg7: memref<1x128xf32, #tpu.memory_space<vmem>>, %arg8: memref<128x128xf32, #tpu.memory_space<vmem>>, %arg9: memref<128x128xf32, #tpu.memory_space<vmem>>) attributes {dimension_semantics = [#tpu.dimension_semantics<parallel>, #tpu.dimension_semantics<arbitrary>], iteration_bounds = array<i64: 2, 2>, scalar_prefetch = 0 : i64, scratch_operands = 1 : i64, tpu.core_type = #tpu.core_type<tc>, window_params = [{transform_indices = @transform_0, window_bounds = array<i64: 128, 128>}, {transform_indices = @transform_1, window_bounds = array<i64: 128, 128>}, {pipeline_mode = #tpu.pipeline_mode<synchronous>, transform_indices = @transform_2, window_bounds = array<i64: 128, 128>}, {pipeline_mode = #tpu.pipeline_mode<synchronous>, transform_indices = @transform_3, window_bounds = array<i64: 1, 128>}, {pipeline_mode = #tpu.pipeline_mode<synchronous>, transform_indices = @transform_4, window_bounds = array<i64: 128, 128>}, {pipeline_mode = #tpu.pipeline_mode<synchronous>, transform_indices = @transform_5, window_bounds = array<i64: 1, 128>}, {transform_indices = @transform_6, window_bounds = array<i64: 128, 128>}]} {
    %c0_i32 = arith.constant 0 : i32
    %0 = arith.cmpi eq, %arg1, %c0_i32 : i32
    %1 = arith.extui %0 : i1 to i32
    %c0_i32_0 = arith.constant 0 : i32
    %2 = arith.cmpi ne, %1, %c0_i32_0 : i32
    scf.if %2 {
      %cst_9 = arith.constant 0.000000e+00 : f32
      %12 = vector.broadcast %cst_9 : f32 to vector<128x128xf32>
      %c0_10 = arith.constant 0 : index
      %c0_11 = arith.constant 0 : index
      %13 = vector.load %arg9[%c0_10, %c0_11] : memref<128x128xf32, #tpu.memory_space<vmem>>, vector<128x128xf32>
      tpu.vector_store %arg9[%c0_10, %c0_11], %12 {strides = array<i32>} : memref<128x128xf32, #tpu.memory_space<vmem>>, vector<128x128xf32>,
    } else {
    }
    %c0 = arith.constant 0 : index
    %c0_1 = arith.constant 0 : index
    %3 = vector.load %arg9[%c0, %c0_1] : memref<128x128xf32, #tpu.memory_space<vmem>>, vector<128x128xf32>
    %c0_2 = arith.constant 0 : index
    %c0_3 = arith.constant 0 : index
    %4 = vector.load %arg2[%c0_2, %c0_3] : memref<128x128xbf16, #tpu.memory_space<vmem>>, vector<128x128xbf16>
    %c0_4 = arith.constant 0 : index
    %c0_5 = arith.constant 0 : index
    %5 = vector.load %arg3[%c0_4, %c0_5] : memref<128x128xbf16, #tpu.memory_space<vmem>>, vector<128x128xbf16>
    %cst = arith.constant dense<0.000000e+00> : vector<128x128xf32>
    %6 = tpu.matmul %4, %5, %cst {dimension_numbers = #tpu.dot_dimension_numbers<[1], [0], [0], [1], [0, 0, 1, 1], [], []>} : vector<128x128xbf16>, vector<128x128xbf16>, vector<128x128xf32> -> vector<128x128xf32>
    %7 = arith.addf %3, %6 : vector<128x128xf32>
    %c0_6 = arith.constant 0 : index
    %c0_7 = arith.constant 0 : index
    %8 = vector.load %arg9[%c0_6, %c0_7] : memref<128x128xf32, #tpu.memory_space<vmem>>, vector<128x128xf32>
    tpu.vector_store %arg9[%c0_6, %c0_7], %7 {strides = array<i32>} : memref<128x128xf32, #tpu.memory_space<vmem>>, vector<128x128xf32>,
    %c1_i32 = arith.constant 1 : i32
    %9 = arith.cmpi eq, %arg1, %c1_i32 : i32
    %10 = arith.extui %9 : i1 to i32
    %c0_i32_8 = arith.constant 0 : i32
    %11 = arith.cmpi ne, %10, %c0_i32_8 : i32
    scf.if %11 {
      %c0_9 = arith.constant 0 : index
      %c0_10 = arith.constant 0 : index
      %12 = vector.load %arg9[%c0_9, %c0_10] : memref<128x128xf32, #tpu.memory_space<vmem>>, vector<128x128xf32>
      %13 = arith.truncf %12 : vector<128x128xf32> to vector<128x128xbf16>
      %c0_11 = arith.constant 0 : index
      %c0_12 = arith.constant 0 : index
      %14 = vector.load %arg4[%c0_11, %c0_12] : memref<128x128xbf16, #tpu.memory_space<vmem>>, vector<128x128xbf16>
      %cst_13 = arith.constant dense<0.000000e+00> : vector<128x128xf32>
      %15 = tpu.matmul %13, %14, %cst_13 {dimension_numbers = #tpu.dot_dimension_numbers<[1], [0], [0], [1], [0, 0, 1, 1], [], []>} : vector<128x128xbf16>, vector<128x128xbf16>, vector<128x128xf32> -> vector<128x128xf32>
      %c0_14 = arith.constant 0 : index
      %c0_15 = arith.constant 0 : index
      %16 = vector.load %arg5[%c0_14, %c0_15] : memref<1x128xf32, #tpu.memory_space<vmem>>, vector<1x128xf32>
      %17 = vector.broadcast %16 : vector<1x128xf32> to vector<128x128xf32>
      %18 = arith.addf %15, %17 : vector<128x128xf32>
      %cst_16 = arith.constant 0.000000e+00 : f32
      %19 = vector.broadcast %cst_16 : f32 to vector<128x128xf32>
      %20 = arith.maximumf %18, %19 : vector<128x128xf32>
      %21 = arith.truncf %20 : vector<128x128xf32> to vector<128x128xbf16>
      %c0_17 = arith.constant 0 : index
      %c0_18 = arith.constant 0 : index
      %22 = vector.load %arg6[%c0_17, %c0_18] : memref<128x128xbf16, #tpu.memory_space<vmem>>, vector<128x128xbf16>
      %cst_19 = arith.constant dense<0.000000e+00> : vector<128x128xf32>
      %23 = tpu.matmul %21, %22, %cst_19 {dimension_numbers = #tpu.dot_dimension_numbers<[1], [0], [0], [1], [0, 0, 1, 1], [], []>} : vector<128x128xbf16>, vector<128x128xbf16>, vector<128x128xf32> -> vector<128x128xf32>
      %c0_20 = arith.constant 0 : index
      %c0_21 = arith.constant 0 : index
      %24 = vector.load %arg7[%c0_20, %c0_21] : memref<1x128xf32, #tpu.memory_space<vmem>>, vector<1x128xf32>
      %25 = vector.broadcast %24 : vector<1x128xf32> to vector<128x128xf32>
      %26 = arith.addf %23, %25 : vector<128x128xf32>
      %c0_22 = arith.constant 0 : index
      %c0_23 = arith.constant 0 : index
      %27 = vector.load %arg8[%c0_22, %c0_23] : memref<128x128xf32, #tpu.memory_space<vmem>>, vector<128x128xf32>
      tpu.vector_store %arg8[%c0_22, %c0_23], %26 {strides = array<i32>} : memref<128x128xf32, #tpu.memory_space<vmem>>, vector<128x128xf32>,
    } else {
    }
    return
  }
  func.func @transform_0(%arg0: i32, %arg1: i32) -> (i32, i32) {
    %c0_i32 = arith.constant 0 : i32
    return %arg0, %arg1 : i32, i32
  }
  func.func @transform_1(%arg0: i32, %arg1: i32) -> (i32, i32) {
    %c0_i32 = arith.constant 0 : i32
    %c0_i32_0 = arith.constant 0 : i32
    return %arg1, %c0_i32 : i32, i32
  }
  func.func @transform_2(%arg0: i32, %arg1: i32) -> (i32, i32) {
    %c0_i32 = arith.constant 0 : i32
    %c0_i32_0 = arith.constant 0 : i32
    %c0_i32_1 = arith.constant 0 : i32
    return %c0_i32, %c0_i32_0 : i32, i32
  }
  func.func @transform_3(%arg0: i32, %arg1: i32) -> (i32, i32) {
    %c0_i32 = arith.constant 0 : i32
    %c0_i32_0 = arith.constant 0 : i32
    %c0_i32_1 = arith.constant 0 : i32
    return %c0_i32, %c0_i32_0 : i32, i32
  }
  func.func @transform_4(%arg0: i32, %arg1: i32) -> (i32, i32) {
    %c0_i32 = arith.constant 0 : i32
    %c0_i32_0 = arith.constant 0 : i32
    %c0_i32_1 = arith.constant 0 : i32
    return %c0_i32, %c0_i32_0 : i32, i32
  }
  func.func @transform_5(%arg0: i32, %arg1: i32) -> (i32, i32) {
    %c0_i32 = arith.constant 0 : i32
    %c0_i32_0 = arith.constant 0 : i32
    %c0_i32_1 = arith.constant 0 : i32
    return %c0_i32, %c0_i32_0 : i32, i32
  }
  func.func @transform_6(%arg0: i32, %arg1: i32) -> (i32, i32) {
    %c0_i32 = arith.constant 0 : i32
    %c0_i32_0 = arith.constant 0 : i32
    return %arg0, %c0_i32 : i32, i32
  }
}

</mosaic_0001>

<bundles_post_ra>
// kernel: tpu_custom_call.1
= control target key start
LH: loop header
LB: loop body
LE: loop exit
PB: predicated region body
PF: predicated region fallthrough
CT: control target
= control target key end

     0   :  { %s2397_s0 = inlined_call_operand.hbm [shape: bf16[256,256], index: 0, kind: input, shape index: {}]   ;;  %s2398_s1 = inlined_call_operand.hbm [shape: bf16[256,128], index: 1, kind: input, shape index: {}]   ;;  %s2399_s2 = inlined_call_operand.hbm [shape: bf16[128,128], index: 2, kind: input, shape index: {}]   ;;  %s2400_s3 = inlined_call_operand.vmem [shape: f32[1,128], index: 3, kind: input, shape index: {}]   ;;  %s2401_s4 = inlined_call_operand.hbm [shape: bf16[128,128], index: 4, kind: input, shape index: {}]   ;;  %s2402_s5 = inlined_call_operand.vmem [shape: f32[1,128], index: 5, kind: input, shape index: {}]   ;;  %s2403_s6 = inlined_call_operand.hbm [shape: f32[256,128], index: 6, kind: output, shape index: {}]  }
   0x1   :  { %2427 = sst [smem:[#allocation26_spill]] %s2399_s2 }
   0x2   :  { %2428 = sst [smem:[#allocation27_spill]] %s2400_s3 }
   0x3   :  { %2429 = sst [smem:[#allocation28_spill]] %s2401_s4 }
   0x4   :  { %2430 = sst [smem:[#allocation29_spill]] %s2402_s5 }
   0x5   :  { %2431 = sst [smem:[#allocation30_spill]] %s2403_s6 }
   0x6   :  { %11 = vsyncpa [#allocation4], 0 }
   0x7   :  { %13 = vsyncpa [#allocation4 + $0x1], 0 }
   0x8   :  { %14 = vsyncpa [#allocation7], 0 }
   0x9   :  { %16 = vsyncpa [#allocation7 + $0x1], 0 }
   0xa   :  { %17 = vsyncpa [#allocation10], 0 }
   0xb   :  { %18 = vsyncpa [#allocation5], 0 }
   0xc   :  { %20 = vsyncpa [#allocation5 + $0x1], 0  ;;  %s1933_s21 = smov 0   ;;  %s1935_s22 = smov 0  }
   0xd   :  { %s1937_s23 = smov 0   ;;  %s1939_s24 = smov 0  }
   0xe   :  { %s1941_s25 = smov 0   ;;  %s1943_s26 = smov 0  }
   0xf   :  { %s1945_s27 = smov 0   ;;  %s1947_s28 = smov 0  }
  0x10   :  { %s1949_s29 = smov 0   ;;  %s1951_s30 = smov 0  }
  0x11   :  { %s1953_s7 = smov 0   ;;  %s1955_s8 = smov 0  }
  0x12   :  { %s1957_s9 = smov 0   ;;  %s1959_s10 = smov 0  }
  0x13 LB: > { %2432 = sst [smem:[#allocation17_spill]] %s1833_s21  ;;  %s2000_s11 = sadd.s32 4294967295, %s1885_s10   ;;  %s1885_s10 = sphi %s1959_s10, %s26_s10   ;;  %s1881_s9 = sphi %s1957_s9, %s2496_s9   ;;  %s1877_s8 = sphi %s1955_s8, %s2495_s8   ;;  %s1873_s7 = sphi %s1953_s7, %s2494_s7   ;;  %s1869_s30 = sphi %s1951_s30, %s2493_s30   ;;  %s1865_s29 = sphi %s1949_s29, %s2492_s29   ;;  %s1861_s28 = sphi %s1947_s28, %s2491_s28   ;;  %s1857_s27 = sphi %s1945_s27, %s2490_s27   ;;  %s1853_s26 = sphi %s1943_s26, %s2489_s26   ;;  %s1849_s25 = sphi %s1941_s25, %s2488_s25   ;;  %s1845_s24 = sphi %s1939_s24, %s2487_s24   ;;  %s1841_s23 = sphi %s1937_s23, %s2486_s23   ;;  %s1837_s22 = sphi %s1935_s22, %s2485_s22   ;;  %s1833_s21 = sphi %s1933_s21, %s2484_s21  }
  0x14   : > { %2433 = sst [smem:[#allocation18_spill]] %s1837_s22  ;;  %s1199_s12 = sadd.s32 4294967294, %s1885_s10  }
  0x15   : > { %2434 = sst [smem:[#allocation19_spill]] %s1869_s30  ;;  %p60_p0 = scmp.ne.s32.totalorder %s1861_s28, %s1857_s27 }
  0x16   : > { %2435 = sst [smem:[#allocation20_spill]] %s1873_s7  ;;  %p2409_p1 = scmp.eq.s32.totalorder %s2000_s11, 0 }
  0x17   : > { %2436 = sst [smem:[#allocation21_spill]] %s2000_s11  ;;  %p86_p2 = scmp.ne.s32.totalorder %s1849_s25, %s1845_s24 }
  0x18   : > { %p2009_p3 = por %p2409_p1, %p60_p0  ;;  %p193_p4 = scmp.ne.s32.totalorder %s1841_s23, %s1837_s22 }
  0x19   : > { %p2017_p5 = por %p86_p2, %p2409_p1  ;;  %p194_p6 = scmp.eq.s32.totalorder %s2000_s11, 3 }
  0x1a   : > { %s2437_s14 = scalar_select %p2009_p3, 1, 0 }
  0x1b   : > { %s2438_s15 = scalar_select %p2017_p5, 1, 0 }
  0x1c   : > { %p199_p7 = scmp.ne.s32.totalorder %s1837_s22, %s1833_s21  ;;  %p200_p8 = scmp.eq.s32.totalorder %s1199_s12, 3 }
  0x1d   : > { %2439 = sst [smem:[#allocation22_spill]] %s2438_s15  ;;  %p2024_p9 = por %p194_p6, %p193_p4 }
  0x1e   : > { %p1200_p10 = scmp.ge.s32.totalorder %s1885_s10, 1  ;;  %p2029_p11 = por %p200_p8, %p199_p7 }
  0x1f   : > { %s2440_s16 = scalar_select %p2024_p9, 1, 0 }
  0x20   : > { %s2442_s17 = scalar_select %p2029_p11, 1, 0 }
  0x21   : > { %2441 = sst [smem:[#allocation23_spill]] %s2440_s16  ;;  %p207_p12 = scmp.lt.s32.totalorder %s1885_s10, 5 }
  0x22   : > { %2443 = sst [smem:[#allocation24_spill]] %s2442_s17  ;;  %s1887_s19 = smov [#allocation8]  }
  0x23   : > { %p2034_p13 = pnand %p1200_p10, %p207_p12  ;;  %s219_s20 = sshll.u32 %s1887_s19, 4  ;;  %s220_s20 = int_to_ptr.vmem [resolvable:$true] %s219_s20 }
  0x24   : > { %s1888_s27 = smov [#allocation9]   ;;  %s2446_s2 = sld [smem:[#allocation26_spill]] }
  0x25   : > { %s2444_s18 = scalar_select %p2034_p13, 1, 0 }
  0x26   : > { %p1435_p0 = pneg %p2034_p13  ;;  %s235_s12 = sshll.u32 %s1888_s27, 4  ;;  %s2046_s12 = int_to_ptr.vmem [resolvable:$true] %s235_s12 }
  0x28   : > { %p2042_p2 = pnand %p1435_p0, %p2409_p1 }
  0x2a   : > { %s1611_s21 = scalar_lea.hbm %s2446_s2, 1024  ;;  %p1613_p6 = pneg %p2042_p2 }
  0x2b   : > { %p1612_p4 = scmp.ne.s32.totalorder %s2446_s2, %s1611_s21  ;;  %p1618_p10 = scmp.lt.u32.totalorder %s1611_s21, %s2446_s2 }
  0x2d   : > { %p1614_p7 = pnand %p1613_p6, %p1612_p4 }
  0x2f   : > { %p1615_p8 = pneg %p1614_p7 }
  0x31   : > { %p1620_p12 = pnand %p1618_p10, %p1615_p8 }
  0x33   : > { %1623 = shalt.err (!%p1620_p12)
}
  0x34   : > { %s1624_s27 = scalar_lea.vmem %s220_s20, 1024  ;;  %p1632_p9 = scmp.lt.s32.totalorder %s220_s20, %s220_s20 }
  0x35   : > { %p1625_p0 = scmp.ne.s32.totalorder %s220_s20, %s1624_s27  ;;  %p1633_p5 = scmp.lt.s32.totalorder %s1624_s27, %s1624_s27 }
  0x37   : > { %p1627_p1 = pnand %p1625_p0, %p1613_p6  ;;  %p1634_p3 = por %p1633_p5, %p1632_p9 }
  0x39   : > { %p1628_p11 = pneg %p1627_p1 }
  0x3b   : > { %p1635_p13 = pnand %p1634_p3, %p1628_p11 }
  0x3d   : > { %1638 = shalt.err (!%p1635_p13)
}
  0x3e   : > { %s2414_s6 = smov 64   ;;  %s2416_s13 = smov 4  }
  0x3f   : > { %1438 = dma.hbm_to_vmem [thread:$0]  (!%p2042_p2), %s2446_s2, 1024, %s220_s20, [#allocation7], %s2414_s6, %s2414_s6, %s2416_s13  }
  0x40   : > { %s2447_s4 = sld [smem:[#allocation28_spill]] }
  0x46   : > { %s1639_s19 = scalar_lea.hbm %s2447_s4, 1024 }
  0x47   : > { %p1640_p1 = scmp.ne.s32.totalorder %s2447_s4, %s1639_s19  ;;  %p1646_p9 = scmp.lt.u32.totalorder %s1639_s19, %s2447_s4 }
  0x49   : > { %p1642_p3 = pnand %p1640_p1, %p1613_p6 }
  0x4b   : > { %p1643_p5 = pneg %p1642_p3 }
  0x4d   : > { %p1648_p11 = pnand %p1646_p9, %p1643_p5 }
  0x4f   : > { %1651 = shalt.err (!%p1648_p11)
}
  0x50   : > { %s1652_s20 = scalar_lea.vmem %s2046_s12, 1024  ;;  %p1660_p8 = scmp.lt.s32.totalorder %s2046_s12, %s2046_s12 }
  0x51   : > { %p1653_p13 = scmp.ne.s32.totalorder %s2046_s12, %s1652_s20  ;;  %p1661_p10 = scmp.lt.s32.totalorder %s1652_s20, %s1652_s20 }
  0x53   : > { %p1655_p4 = pnand %p1653_p13, %p1613_p6  ;;  %p1662_p12 = por %p1661_p10, %p1660_p8 }
  0x55   : > { %p1656_p7 = pneg %p1655_p4 }
  0x57   : > { %p1663_p0 = pnand %p1662_p12, %p1656_p7 }
  0x59   : > { %1666 = shalt.err (!%p1663_p0)
}
  0x5a   : > { %1441 = dma.hbm_to_vmem [thread:$0]  (!%p2042_p2), %s2447_s4, 1024, %s2046_s12, [#allocation10], %s2414_s6, %s2414_s6, %s2416_s13  }
  0x5b   : > { %s35_s30 = sadd.s32 1, %s1877_s8  ;;  %s38_s24 = sadd.s32 1, %s1881_s9 }
  0x5c   : > { %p36_p6 = scmp.ge.s32.totalorder %s35_s30, 2  ;;  %s47_s21 = sadd.s32 1, %s1865_s29 }
  0x5d   : > { %p54_p1 = scmp.ne.s32.totalorder %s1865_s29, %s1861_s28  ;;  %p2426_p3 = scmp.eq.s32.totalorder %s1885_s10, 0 }
  0x5e   : > { %s2498_s30 = smov (%p36_p6, %s35_s30), 0  ;;  %s2500_s24 = smov (!%p36_p6, %s38_s24), %s1881_s9 }
  0x5f   : > { %2448 = sst [smem:[#allocation25_spill]] %s2498_s30  ;;  %s2112_s7 = ssub.s32 %s1877_s8, %s2498_s30 }
  0x60   : > { %p2116_p2 = por %p2426_p3, %p54_p1  ;;  %p40_p5 = scmp.ge.s32.totalorder %s2500_s24, 2 }
  0x61   : > { %p71_p9 = scmp.eq.s32.totalorder %s2112_s7, 0  ;;  %p2425_p11 = scmp.lt.s32.totalorder %s1885_s10, 4 }
  0x62   : > { %s252_s16 = sand.u32 1, %s1865_s29   ;;  %s2502_s24 = smov (%p40_p5, %s2500_s24), 0 }
  0x63   : > { %s1204_s17 = sshll.u32 %s252_s16, 6  ;;  %s42_s19 = ssub.s32 %s1881_s9, %s2502_s24 }
  0x64   : > { %s44_s27 = sor.u32 %s2112_s7, %s42_s19  ;;  %p181_p13 = scmp.eq.s32.totalorder %s42_s19, 0 }
  0x65   : > { %p45_p4 = scmp.eq.s32.totalorder %s44_s27, 0  ;;  %s1258_s20 = sshll.u32 %s1881_s9, 5 }
  0x66   : > { %s2450_s3 = sadd.s32 1, %s1841_s23  ;;  %s262_s13 = sadd.s32 %s1877_s8, %s1258_s20 }
  0x67   : > { %s2132_s5 = scalar_select %p181_p13, %s1841_s23, %s2450_s3  }
  0x68   : > { %s2135_s6 = scalar_select %p45_p4, %s1865_s29, %s47_s21  }
  0x69   : > { %s256_s2 = scalar_lea.vmem [#allocation3], %s1204_s17  ;;  %s1207_s30 = sshll.u32 %s262_s13, 6 }
  0x6a   : > { %s265_s4 = sshll.u32 %s256_s2, 4  ;;  %s2143_s11 = scalar_lea.hbm %s2397_s0, %s1207_s30  ;;  %s2138_s4 = int_to_ptr.vmem [resolvable:$true] %s265_s4 }
  0x6b   : > { %p2149_p7 = pnand %p2425_p11, %p2116_p2  ;;  %s2153_s2 = scalar_lea.sflag [#allocation4], %s252_s16 }
  0x6c   : > { %s1667_s13 = scalar_lea.hbm %s2143_s11, 1024  ;;  %s1672_s30 = scalar_lea.hbm %s2397_s0, 4096 }
  0x6d   : > { %p1668_p8 = scmp.ne.s32.totalorder %s2143_s11, %s1667_s13  ;;  %p1669_p10 = pneg %p2149_p7 }
  0x6e   : > { %p1673_p6 = scmp.lt.u32.totalorder %s2143_s11, %s2397_s0  ;;  %p1674_p1 = scmp.lt.u32.totalorder %s1672_s30, %s1667_s13 }
  0x6f   : > { %p1670_p12 = pnand %p1669_p10, %p1668_p8  ;;  %p1676_p5 = scmp.lt.u32.totalorder %s1667_s13, %s2143_s11 }
  0x70   : > { %p1675_p2 = por %p1674_p1, %p1673_p6 }
  0x71   : > { %p1671_p0 = pneg %p1670_p12 }
  0x72   : > { %p1677_p13 = por %p1676_p5, %p1675_p2 }
  0x74   : > { %p1678_p4 = pnand %p1677_p13, %p1671_p0 }
  0x76   : > { %1681 = shalt.err (!%p1678_p4)
}
  0x77   : > { %s1682_s16 = scalar_lea.vmem %s2138_s4, 1024  ;;  %s1891_s19 = smov [#allocation3]  }
  0x78   : > { %p1683_p8 = scmp.ne.s32.totalorder %s2138_s4, %s1682_s16  ;;  %s1687_s27 = sshll.u32 %s1891_s19, 4  ;;  %s1688_s27 = int_to_ptr.vmem [resolvable:$false] %s1687_s27 }
  0x79   : > { %s1689_s20 = scalar_lea.vmem %s1688_s27, 2048  ;;  %p1690_p3 = scmp.lt.s32.totalorder %s2138_s4, %s1688_s27 }
  0x7a   : > { %p1685_p12 = pnand %p1683_p8, %p1669_p10  ;;  %p1691_p6 = scmp.lt.s32.totalorder %s1689_s20, %s1682_s16 }
  0x7c   : > { %p1686_p11 = pneg %p1685_p12  ;;  %p1692_p1 = por %p1691_p6, %p1690_p3 }
  0x7e   : > { %p1693_p2 = pnand %p1692_p1, %p1686_p11 }
  0x80   : > { %1696 = shalt.err (!%p1693_p2)
}
  0x81   : > { %s1892_s3 = smov 128   ;;  %s2452_s13 = smov 4  }
  0x82   : > { %s2453_s22 = smov 64   ;;  %s73_s15 = sadd.s32 1, %s1853_s26 }
  0x83   : > { %1445 = dma.hbm_to_vmem [thread:$0]  (!%p2149_p7), %s2143_s11, 1024, %s2138_s4, %s2153_s2, %s1892_s3, %s2453_s22, %s2452_s13  }
  0x84   : > { %p80_p3 = scmp.ne.s32.totalorder %s1853_s26, %s1849_s25  ;;  %p2454_p11 = scmp.eq.s32.totalorder %s1885_s10, 0 }
  0x85   : > { %s2189_s21 = scalar_select %p71_p9, %s1853_s26, %s73_s15  }
  0x86   : > { %p82_p10 = por %p80_p3, %p2454_p11  ;;  %s275_s30 = sand.u32 1, %s1885_s10  }
  0x87   : > { %s277_s12 = sand.u32 1, %s1853_s26   ;;  %s1259_s16 = sshll.u32 %s1877_s8, 10 }
  0x88   : > { %s1208_s17 = sshll.u32 %s277_s12, 6  ;;  %s2199_s20 = scalar_lea.hbm %s2398_s1, %s1259_s16 }
  0x89   : > { %s279_s4 = scalar_lea.vmem [#allocation6], %s1208_s17  ;;  %p2455_p7 = scmp.lt.s32.totalorder %s1885_s10, 4 }
  0x8a   : > { %s286_s11 = sshll.u32 %s279_s4, 4  ;;  %s2209_s2 = scalar_lea.sflag [#allocation7], %s275_s30  ;;  %s2207_s11 = int_to_ptr.vmem [resolvable:$true] %s286_s11 }
  0x8b   : > { %p2203_p9 = pnand %p2455_p7, %p82_p10  ;;  %s1697_s3 = scalar_lea.hbm %s2199_s20, 1024 }
  0x8c   : > { %p1698_p0 = scmp.ne.s32.totalorder %s2199_s20, %s1697_s3  ;;  %s1702_s17 = scalar_lea.hbm %s2398_s1, 2048 }
  0x8d   : > { %p1699_p5 = pneg %p2203_p9  ;;  %p1703_p8 = scmp.lt.u32.totalorder %s2199_s20, %s2398_s1 }
  0x8e   : > { %p1704_p12 = scmp.lt.u32.totalorder %s1702_s17, %s1697_s3  ;;  %p1706_p1 = scmp.lt.u32.totalorder %s1697_s3, %s2199_s20 }
  0x8f   : > { %p1700_p13 = pnand %p1699_p5, %p1698_p0 }
  0x90   : > { %p1705_p6 = por %p1704_p12, %p1703_p8 }
  0x91   : > { %p1701_p4 = pneg %p1700_p13 }
  0x92   : > { %p1707_p2 = por %p1706_p1, %p1705_p6 }
  0x94   : > { %p1708_p3 = pnand %p1707_p2, %p1701_p4 }
  0x96   : > { %1711 = shalt.err (!%p1708_p3)
}
  0x97   : > { %s1712_s30 = scalar_lea.vmem %s2207_s11, 1024  ;;  %s1893_s27 = smov [#allocation6]  }
  0x98   : > { %p1713_p11 = scmp.ne.s32.totalorder %s2207_s11, %s1712_s30  ;;  %s1717_s4 = sshll.u32 %s1893_s27, 4  ;;  %s1718_s4 = int_to_ptr.vmem [resolvable:$false] %s1717_s4 }
  0x99   : > { %s1719_s15 = scalar_lea.vmem %s1718_s4, 2048  ;;  %p1720_p0 = scmp.lt.s32.totalorder %s2207_s11, %s1718_s4 }
  0x9a   : > { %p1715_p10 = pnand %p1713_p11, %p1699_p5  ;;  %p1721_p13 = scmp.lt.s32.totalorder %s1719_s15, %s1712_s30 }
  0x9c   : > { %p1716_p7 = pneg %p1715_p10  ;;  %p1722_p8 = por %p1721_p13, %p1720_p0 }
  0x9e   : > { %p1723_p12 = pnand %p1722_p8, %p1716_p7 }
  0xa0   : > { %1726 = shalt.err (!%p1723_p12)
}
  0xa1   : > { %1448 = dma.hbm_to_vmem [thread:$0]  (!%p2203_p9), %s2199_s20, 1024, %s2207_s11, %s2209_s2, %s2453_s22, %s2453_s22, %s2452_s13  }
  0xa2   : > { %p2457_p5 = scmp.ne.s32.totalorder %s2444_s18, 0 }
  0xa3   : > { %s300_s3 = sand.u32 (!%p2457_p5), 1, %s1861_s28   ;;  %p2458_p4 = scmp.ne.s32.totalorder (!%p2457_p5), %s2437_s14, 0 }
  0xa4   : > { %298 = sbr.rel (%p2457_p5) target bundleno = 957 (0x3bd), region = 44  ;;  %s1212_s12 = sshll.u32 (!%p2457_p5), %s300_s3, 6 }
  0xa5   : > { %s301_s17 = scalar_lea.sflag (!%p2457_p5), [#allocation4], %s300_s3  ;;  %s2243_s16 = scalar_lea.vmem (!%p2457_p5), [#allocation3], %s1212_s12 }
  0xab   : > { %1812 = dma.done.wait (%p2458_p4), %s301_s17, 1024  }
  0xac   : > { %1814 = vsyncadd (%p2458_p4), %s301_s17, 4294966272  ;;  %s2459_s7 = sld [smem:[#allocation21_spill]]  ;;  %s2460_s19 = sld [smem:[#allocation22_spill]] }
  0xad   : > { %s311_s13 = sand.u32 1, %s1849_s25  }
  0xae   : > { %s1213_s22 = sshll.u32 %s311_s13, 6 }
  0xaf   : > { %s2251_s20 = scalar_lea.vmem [#allocation6], %s1213_s22 }
  0xb2   : > { %s309_s30 = sand.u32 1, %s2459_s7   ;;  %p2461_p9 = scmp.ne.s32.totalorder %s2460_s19, 0 }
  0xb3   : > { %s310_s18 = scalar_lea.sflag [#allocation7], %s309_s30 }
  0xb4   : > { %1816 = dma.done.wait (%p2461_p9), %s310_s18, 1024  }
  0xb5   : > { %1818 = vsyncadd (%p2461_p9), %s310_s18, 4294966272  ;;  %p2462_p6 = scmp.eq.s32.totalorder %s2459_s7, 0 }
  0xb7   : > { %1820 = dma.done.wait (%p2462_p6), [#allocation7], 1024   ;;  %p2463_p1 = pmov %p2462_p6 }
  0xb9   : > { %1822 = vsyncadd (%p2463_p1), [#allocation7], 4294966272  ;;  %p2464_p2 = pmov %p2463_p1 }
  0xba   : > { %p2465_p3 = pmov %p2463_p1 }
  0xbb   : > { %1824 = dma.done.wait (%p2464_p2), [#allocation10], 1024  }
  0xbc   : > { %1826 = vsyncadd (%p2465_p3), [#allocation10], 4294966272  ;;  %s2466_s14 = sld [smem:[#allocation18_spill]]  ;;  %s2467_s4 = sld [smem:[#allocation19_spill]] }
  0xc2   : > { %s352_s11 = sand.u32 1, %s2466_s14   ;;  %p1217_p11 = scmp.ne.s32.totalorder %s2467_s4, 0 }
  0xc3   : > { %s1216_s2 = sshll.u32 %s352_s11, 7  ;;  %v1894_v0 = vmov (!%p1217_p11), 0.0  }
  0xc4   : > { %s2268_s27 = scalar_lea.vmem [#allocation11], %s1216_s2  ;;  %362 = sbr.rel (%p1217_p11) target bundleno = 204 (0xcc), region = 64  ;;  %363 = vst [vmem:[#allocation2] sm:$0xff] (!%p1217_p11), %v1894_v0  ;;  %364 = vst [vmem:[#allocation2 + $0x8] sm:$0xff] (!%p1217_p11), %v1894_v0 }
  0xc5   : > { %365 = vst [vmem:[#allocation2 + $0x10] sm:$0xff] (!%p1217_p11), %v1894_v0  ;;  %366 = vst [vmem:[#allocation2 + $0x18] sm:$0xff] (!%p1217_p11), %v1894_v0 }
  0xc6   : > { %367 = vst [vmem:[#allocation2 + $0x20] sm:$0xff] (!%p1217_p11), %v1894_v0  ;;  %368 = vst [vmem:[#allocation2 + $0x28] sm:$0xff] (!%p1217_p11), %v1894_v0 }
  0xc7   : > { %369 = vst [vmem:[#allocation2 + $0x30] sm:$0xff] (!%p1217_p11), %v1894_v0  ;;  %370 = vst [vmem:[#allocation2 + $0x38] sm:$0xff] (!%p1217_p11), %v1894_v0 }
  0xc8   : > { %371 = vst [vmem:[#allocation2 + $0x40] sm:$0xff] (!%p1217_p11), %v1894_v0  ;;  %372 = vst [vmem:[#allocation2 + $0x48] sm:$0xff] (!%p1217_p11), %v1894_v0 }
  0xc9   : > { %373 = vst [vmem:[#allocation2 + $0x50] sm:$0xff] (!%p1217_p11), %v1894_v0  ;;  %374 = vst [vmem:[#allocation2 + $0x58] sm:$0xff] (!%p1217_p11), %v1894_v0 }
  0xca   : > { %375 = vst [vmem:[#allocation2 + $0x60] sm:$0xff] (!%p1217_p11), %v1894_v0  ;;  %376 = vst [vmem:[#allocation2 + $0x68] sm:$0xff] (!%p1217_p11), %v1894_v0 }
  0xcb   : > { %377 = vst [vmem:[#allocation2 + $0x70] sm:$0xff] %v1894_v0  ;;  %378 = vst [vmem:[#allocation2 + $0x78] sm:$0xff] %v1894_v0 }
  0xcc PF: > { %v1579_v1 = vld [vmem:[%s2251_s20] sm:$0xff]   ;;  %v1580_v2 = vld [vmem:[%s2251_s20 + $0x8] sm:$0xff]   ;;  %v1581_v3 = vld [vmem:[%s2251_s20 + $0x10] sm:$0xff]   ;;  %s2468_s15 = sld [smem:[#allocation19_spill]] }
  0xcd   : > { %1309 = vmatprep.subr.bf16.mxu0 %v1579_v1  ;;  %1405 = vmatprep.subr.bf16.mxu1 %v1579_v1  ;;  %v1582_v4 = vld [vmem:[%s2251_s20 + $0x18] sm:$0xff]   ;;  %v1587_v5 = vld [vmem:[%s2243_s16] sm:$0xff]   ;;  %v1584_v8 = vld [vmem:[%s2251_s20 + $0x28] sm:$0xff]  }
  0xce   : > { %1310 = vmatpush3.bf16.msra.mxu0 %v1579_v1  ;;  %1413 = vmatpush3.bf16.msra.mxu1 %v1579_v1  ;;  %v1588_v6 = vld [vmem:[%s2243_s16 + $0x20] sm:$0xff]   ;;  %v1585_v9 = vld [vmem:[%s2251_s20 + $0x30] sm:$0xff]   ;;  %v1586_v10 = vld [vmem:[%s2251_s20 + $0x38] sm:$0xff]  }
  0xcf   : > { %1311 = vmatprep.subr.bf16.mxu0 %v1580_v2  ;;  %1406 = vmatprep.subr.bf16.mxu1 %v1580_v2  ;;  %v1583_v7 = vld [vmem:[%s2251_s20 + $0x20] sm:$0xff]   ;;  %v1589_v11 = vld [vmem:[%s2243_s16 + $0x8] sm:$0xff]   ;;  %v1591_v13 = vld [vmem:[%s2243_s16 + $0x10] sm:$0xff]  }
  0xd0   : > { %1325 = vmatprep.mubr.bf16.mxu0 %v1587_v5  ;;  %1333 = vmatprep.mubr.bf16.mxu1 %v1588_v6  ;;  %v1590_v12 = vld [vmem:[%s2243_s16 + $0x28] sm:$0xff]   ;;  %v1592_v14 = vld [vmem:[%s2243_s16 + $0x30] sm:$0xff]   ;;  %v1593_v15 = vld [vmem:[%s2243_s16 + $0x18] sm:$0xff]  }
  0xd1   : > { %v1594_v16 = vld [vmem:[%s2243_s16 + $0x38] sm:$0xff]   ;;  %v381_v17 = vld [vmem:[#allocation2 + $0x10] sm:$0xff]  ;;  %v379_v19 = vld [vmem:[#allocation2] sm:$0xff] }
  0xd2   : > { %1312 = vmatpush3.bf16.msra.mxu0 %v1580_v2  ;;  %1414 = vmatpush3.bf16.msra.mxu1 %v1580_v2  ;;  %v389_v18 = vld [vmem:[#allocation2 + $0x50] sm:$0xff]  ;;  %v387_v20 = vld [vmem:[#allocation2 + $0x40] sm:$0xff]  ;;  %v382_v23 = vld [vmem:[#allocation2 + $0x18] sm:$0xff]  ;;  %p1234_p10 = scmp.ne.s32.totalorder %s2468_s15, 1 }
  0xd3   : > { %1313 = vmatprep.subr.bf16.mxu0 %v1581_v3  ;;  %1407 = vmatprep.subr.bf16.mxu1 %v1581_v3  ;;  %v390_v24 = vld [vmem:[#allocation2 + $0x58] sm:$0xff]  ;;  %v380_v29 = vld [vmem:[#allocation2 + $0x8] sm:$0xff]  ;;  %v385_v41 = vld [vmem:[#allocation2 + $0x30] sm:$0xff]  ;;  %s2469_s17 = sld [smem:[#allocation27_spill]] (!%p1234_p10)  ;;  %s2470_s19 = sld [smem:[#allocation29_spill]] (!%p1234_p10) }
  0xd4   : > { %v388_v30 = vld [vmem:[#allocation2 + $0x48] sm:$0xff]  ;;  %v393_v42 = vld [vmem:[#allocation2 + $0x70] sm:$0xff]  ;;  %v383_v43 = vld [vmem:[#allocation2 + $0x20] sm:$0xff] }
  0xd5   : > { %v391_v44 = vld [vmem:[#allocation2 + $0x60] sm:$0xff]  ;;  %v386_v47 = vld [vmem:[#allocation2 + $0x38] sm:$0xff]  ;;  %v384_v53 = vld [vmem:[#allocation2 + $0x28] sm:$0xff] }
  0xd6   : > { %1314 = vmatpush3.bf16.msra.mxu0 %v1581_v3  ;;  %1415 = vmatpush3.bf16.msra.mxu1 %v1581_v3  ;;  %v394_v48 = vld [vmem:[#allocation2 + $0x78] sm:$0xff]  ;;  %v392_v54 = vld [vmem:[#allocation2 + $0x68] sm:$0xff]  ;;  %v1595_v1 = vld [vmem:[#allocation8] sm:$0xff] (!%p1234_p10)  }
  0xd7   : > { %1315 = vmatprep.subr.bf16.mxu0 %v1582_v4  ;;  %1408 = vmatprep.subr.bf16.mxu1 %v1582_v4  ;;  %v1596_v2 = vld [vmem:[#allocation8 + $0x8] sm:$0xff] (!%p1234_p10)   ;;  %v1597_v3 = vld [vmem:[#allocation8 + $0x10] sm:$0xff] (!%p1234_p10)  }
  0xda   : > { %1316 = vmatpush3.bf16.msra.mxu0 %v1582_v4  ;;  %1416 = vmatpush3.bf16.msra.mxu1 %v1582_v4  ;;  %v1598_v4 = vld [vmem:[#allocation8 + $0x18] sm:$0xff] (!%p1234_p10)  }
  0xdb   : > { %1317 = vmatprep.subr.bf16.mxu0 %v1583_v7  ;;  %1409 = vmatprep.subr.bf16.mxu1 %v1583_v7 }
  0xde   : > { %1318 = vmatpush3.bf16.msra.mxu0 %v1583_v7  ;;  %1417 = vmatpush3.bf16.msra.mxu1 %v1583_v7 }
  0xdf   : > { %1319 = vmatprep.subr.bf16.mxu0 %v1584_v8  ;;  %1410 = vmatprep.subr.bf16.mxu1 %v1584_v8 }
  0xe2   : > { %1320 = vmatpush3.bf16.msra.mxu0 %v1584_v8  ;;  %1418 = vmatpush3.bf16.msra.mxu1 %v1584_v8  ;;  %v1599_v8 = vld [vmem:[#allocation8 + $0x20] sm:$0xff] (!%p1234_p10)  }
  0xe3   : > { %1321 = vmatprep.subr.bf16.mxu0 %v1585_v9  ;;  %1411 = vmatprep.subr.bf16.mxu1 %v1585_v9 }
  0xe6   : > { %1322 = vmatpush3.bf16.msra.mxu0 %v1585_v9  ;;  %1419 = vmatpush3.bf16.msra.mxu1 %v1585_v9  ;;  %v1603_v9 = vld [vmem:[#allocation9] sm:$0xff] (!%p1234_p10)  }
  0xe7   : > { %1323 = vmatprep.subr.bf16.mxu0 %v1586_v10  ;;  %1412 = vmatprep.subr.bf16.mxu1 %v1586_v10 }
  0xea   : > { %1324 = vmatpush3.bf16.msra.mxu0 %v1586_v10  ;;  %1420 = vmatpush3.bf16.msra.mxu1 %v1586_v10  ;;  %v1604_v10 = vld [vmem:[#allocation9 + $0x8] sm:$0xff] (!%p1234_p10)  }
  0xeb   : > { %1341 = vmatprep.subr.bf16.mxu0 (!%p1234_p10), %v1595_v1  ;;  %1373 = vmatprep.subr.bf16.mxu1 (!%p1234_p10), %v1603_v9 }
  0xed   : > { %1326 = vmatmul.mubr.bf16.vlgmr.msra.gmra.mrb[0].mxu0 %v1589_v11  ;;  %1334 = vmatmul.mubr.bf16.vlgmr.msra.gmra.mrb[0].mxu1 %v1590_v12  ;;  %v1600_v11 = vld [vmem:[#allocation8 + $0x28] sm:$0xff] (!%p1234_p10)   ;;  %v1605_v12 = vld [vmem:[#allocation9 + $0x10] sm:$0xff] (!%p1234_p10)  }
  0xee   : > { %1329 = vmatprep.mubr.bf16.mxu0 %v1591_v13  ;;  %1337 = vmatprep.mubr.bf16.mxu1 %v1592_v14  ;;  %v1601_v13 = vld [vmem:[#allocation8 + $0x30] sm:$0xff] (!%p1234_p10)   ;;  %v1606_v14 = vld [vmem:[#allocation9 + $0x18] sm:$0xff] (!%p1234_p10)  }
  0xef   : > { %1342 = vmatpush3.bf16.msra.mxu0 (!%p1234_p10), %v1595_v1  ;;  %1374 = vmatpush3.bf16.msra.mxu1 (!%p1234_p10), %v1603_v9 }
  0xf0   : > { %1343 = vmatprep.subr.bf16.mxu0 (!%p1234_p10), %v1596_v2  ;;  %1375 = vmatprep.subr.bf16.mxu1 (!%p1234_p10), %v1604_v10 }
  0xf3   : > { %1344 = vmatpush3.bf16.msra.mxu0 (!%p1234_p10), %v1596_v2  ;;  %1376 = vmatpush3.bf16.msra.mxu1 (!%p1234_p10), %v1604_v10 }
  0xf4   : > { %1345 = vmatprep.subr.bf16.mxu0 (!%p1234_p10), %v1597_v3  ;;  %1377 = vmatprep.subr.bf16.mxu1 (!%p1234_p10), %v1605_v12 }
  0xf5   : > { %1330 = vmatmul.mubr.bf16.gmra.mrb[4].mxu0 %v1593_v15  ;;  %1338 = vmatmul.mubr.bf16.gmra.mrb[4].mxu1 %v1594_v16  ;;  %v1602_v15 = vld [vmem:[#allocation8 + $0x38] sm:$0xff] (!%p1234_p10)   ;;  %v1607_v16 = vld [vmem:[#allocation9 + $0x20] sm:$0xff] (!%p1234_p10)  }
  0xf7   : > { %1346 = vmatpush3.bf16.msra.mxu0 (!%p1234_p10), %v1597_v3  ;;  %1378 = vmatpush3.bf16.msra.mxu1 (!%p1234_p10), %v1605_v12 }
  0xf8   : > { %1347 = vmatprep.subr.bf16.mxu0 (!%p1234_p10), %v1598_v4  ;;  %1379 = vmatprep.subr.bf16.mxu1 (!%p1234_p10), %v1606_v14 }
  0xfb   : > { %1348 = vmatpush3.bf16.msra.mxu0 (!%p1234_p10), %v1598_v4  ;;  %1380 = vmatpush3.bf16.msra.mxu1 (!%p1234_p10), %v1606_v14 }
  0xfc   : > { %1349 = vmatprep.subr.bf16.mxu0 (!%p1234_p10), %v1599_v8  ;;  %1381 = vmatprep.subr.bf16.mxu1 (!%p1234_p10), %v1607_v16 }
  0xff   : > { %1350 = vmatpush3.bf16.msra.mxu0 (!%p1234_p10), %v1599_v8  ;;  %1382 = vmatpush3.bf16.msra.mxu1 (!%p1234_p10), %v1607_v16 }
 0x100   : > { %1351 = vmatprep.subr.bf16.mxu0 (!%p1234_p10), %v1600_v11 }
 0x103   : > { %1352 = vmatpush3.bf16.msra.mxu0 (!%p1234_p10), %v1600_v11 }
 0x104   : > { %1353 = vmatprep.subr.bf16.mxu0 (!%p1234_p10), %v1601_v13 }
 0x107   : > { %1354 = vmatpush3.bf16.msra.mxu0 (!%p1234_p10), %v1601_v13 }
 0x108   : > { %1355 = vmatprep.subr.bf16.mxu0 (!%p1234_p10), %v1602_v15 }
 0x10b   : > { %1356 = vmatpush3.bf16.msra.mxu0 (!%p1234_p10), %v1602_v15 }
 0x1c0   : > { %v1327_v21 = vpop.f32.mrb[0].mxu0  ;;  %v1335_v22 = vpop.f32.mrb[0].mxu1 }
 0x1c1   : > { %v622_v25 = vadd.f32 %v1327_v21, %v381_v17  ;;  %v630_v26 = vadd.f32 %v1335_v22, %v389_v18  ;;  %v557_v27 = vpop.f32.mrb[1].mxu0  ;;  %v589_v28 = vpop.f32.mrb[1].mxu1  ;;  %v1608_v22 = vld [vmem:[#allocation9 + $0x28] sm:$0xff] (!%p1234_p10)  }
 0x1c2   : > { %v620_v31 = vadd.f32 %v557_v27, %v379_v19  ;;  %v628_v32 = vadd.f32 %v589_v28, %v387_v20  ;;  %v1328_v33 = vpop.f32.mrb[2].mxu0  ;;  %v1336_v34 = vpop.f32.mrb[2].mxu1  ;;  %1383 = vmatprep.subr.bf16.mxu1 (!%p1234_p10), %v1608_v22 }
 0x1c3   : > { %638 = vst [vmem:[#allocation2 + $0x10] sm:$0xff] %v622_v25  ;;  %646 = vst [vmem:[#allocation2 + $0x50] sm:$0xff] %v630_v26  ;;  %v623_v35 = vadd.f32 %v1328_v33, %v382_v23  ;;  %v631_v36 = vadd.f32 %v1336_v34, %v390_v24  ;;  %v560_v37 = vpop.f32.mrb[3].mxu0  ;;  %v592_v38 = vpop.f32.mrb[3].mxu1  ;;  %1384 = vmatpush3.bf16.msra.mxu1 (!%p1234_p10), %v1608_v22 }
 0x1c4   : > { %636 = vst [vmem:[#allocation2] sm:$0xff] %v620_v31  ;;  %644 = vst [vmem:[#allocation2 + $0x40] sm:$0xff] %v628_v32  ;;  %v621_v39 = vadd.f32 %v560_v37, %v380_v29  ;;  %v629_v40 = vadd.f32 %v592_v38, %v388_v30 }
 0x1c5   : > { %639 = vst [vmem:[#allocation2 + $0x18] sm:$0xff] %v623_v35  ;;  %647 = vst [vmem:[#allocation2 + $0x58] sm:$0xff] %v631_v36 }
 0x1c6   : > { %637 = vst [vmem:[#allocation2 + $0x8] sm:$0xff] %v621_v39  ;;  %645 = vst [vmem:[#allocation2 + $0x48] sm:$0xff] %v629_v40  ;;  %v1609_v39 = vld [vmem:[#allocation9 + $0x30] sm:$0xff] (!%p1234_p10)   ;;  %v1610_v40 = vld [vmem:[#allocation9 + $0x38] sm:$0xff] (!%p1234_p10)  }
 0x1c7   : > { %1385 = vmatprep.subr.bf16.mxu1 (!%p1234_p10), %v1609_v39 }
 0x1c8   : > { %v1331_v45 = vpop.f32.mrb[4].mxu0  ;;  %v1339_v46 = vpop.f32.mrb[4].mxu1  ;;  %655 = sbr.rel (%p1234_p10) target bundleno = 929 (0x3a1), region = 68  ;;  %1386 = vmatpush3.bf16.msra.mxu1 (!%p1234_p10), %v1609_v39 }
 0x1c9   : > { %v626_v49 = vadd.f32 %v1331_v45, %v385_v41  ;;  %v634_v50 = vadd.f32 %v1339_v46, %v393_v42  ;;  %v573_v51 = vpop.f32.mrb[5].mxu0  ;;  %v605_v52 = vpop.f32.mrb[5].mxu1  ;;  %1387 = vmatprep.subr.bf16.mxu1 (!%p1234_p10), %v1610_v40  ;;  %v1235_v41 = vld [vmem:[%s2469_s17] ss:$0 sm:$0xff] (!%p1234_p10) }
 0x1ca   : > { %v624_v55 = vadd.f32 %v573_v51, %v383_v43  ;;  %v632_v56 = vadd.f32 %v605_v52, %v391_v44  ;;  %v1332_v57 = vpop.f32.mrb[6].mxu0  ;;  %v1340_v58 = vpop.f32.mrb[6].mxu1  ;;  %v658_v17 = vld [vmem:[#allocation2 + $0x10] sm:$0xff] (!%p1234_p10) }
 0x1cb   : > { %642 = vst [vmem:[#allocation2 + $0x30] sm:$0xff] %v626_v49  ;;  %650 = vst [vmem:[#allocation2 + $0x70] sm:$0xff] %v634_v50  ;;  %v627_v59 = vadd.f32 %v1332_v57, %v386_v47  ;;  %v635_v60 = vadd.f32 %v1340_v58, %v394_v48  ;;  %v576_v61 = vpop.f32.mrb[7].mxu0  ;;  %v608_v62 = vpop.f32.mrb[7].mxu1  ;;  %v656_v5 = vld [vmem:[#allocation2] sm:$0xff] (!%p1234_p10)  ;;  %v666_v30 = vld [vmem:[#allocation2 + $0x50] sm:$0xff] (!%p1234_p10) }
 0x1cc   : > { %640 = vst [vmem:[#allocation2 + $0x20] sm:$0xff] %v624_v55  ;;  %648 = vst [vmem:[#allocation2 + $0x60] sm:$0xff] %v632_v56  ;;  %v625_v63 = vadd.f32 %v576_v61, %v384_v53  ;;  %v633_v0 = vadd.f32 %v608_v62, %v392_v54  ;;  %v659_v18 = vld [vmem:[#allocation2 + $0x18] sm:$0xff] (!%p1234_p10)  ;;  %v664_v26 = vld [vmem:[#allocation2 + $0x40] sm:$0xff] (!%p1234_p10)  ;;  %1388 = vmatpush3.bf16.msra.mxu1 (!%p1234_p10), %v1610_v40 }
 0x1cd   : > { %643 = vst [vmem:[#allocation2 + $0x38] sm:$0xff] %v627_v59  ;;  %651 = vst [vmem:[#allocation2 + $0x78] sm:$0xff] %v635_v60  ;;  %v657_v6 = vld [vmem:[#allocation2 + $0x8] sm:$0xff] (!%p1234_p10)  ;;  %v673_v21 = vpack.c.bf16 (!%p1234_p10), %v659_v18, %v658_v17  ;;  %v667_v31 = vld [vmem:[#allocation2 + $0x58] sm:$0xff] (!%p1234_p10) }
 0x1ce   : > { %641 = vst [vmem:[#allocation2 + $0x28] sm:$0xff] %v625_v63  ;;  %649 = vst [vmem:[#allocation2 + $0x68] sm:$0xff] %v633_v0  ;;  %v672_v7 = vpack.c.bf16 (!%p1234_p10), %v657_v6, %v656_v5  ;;  %v665_v27 = vld [vmem:[#allocation2 + $0x48] sm:$0xff] (!%p1234_p10)  ;;  %v677_v34 = vpack.c.bf16 (!%p1234_p10), %v667_v31, %v666_v30 }
 0x1cf   : > { %v676_v29 = vpack.c.bf16 %v665_v27, %v664_v26 }
 0x1d0   : > { %1357 = vmatprep.mubr.bf16.mxu0 %v672_v7 }
 0x1d1   : > { %1358 = vmatmul.mubr.bf16.vlgmr.msra.gmra.mrb[0].mxu0 %v673_v21 }
 0x1d2   : > { %v662_v24 = vld [vmem:[#allocation2 + $0x30] sm:$0xff] }
 0x1d3   : > { %v660_v19 = vld [vmem:[#allocation2 + $0x20] sm:$0xff]  ;;  %v670_v36 = vld [vmem:[#allocation2 + $0x70] sm:$0xff] }
 0x1d4   : > { %v663_v25 = vld [vmem:[#allocation2 + $0x38] sm:$0xff]  ;;  %v668_v32 = vld [vmem:[#allocation2 + $0x60] sm:$0xff] }
 0x1d5   : > { %v661_v20 = vld [vmem:[#allocation2 + $0x28] sm:$0xff]  ;;  %v675_v28 = vpack.c.bf16 %v663_v25, %v662_v24  ;;  %v671_v37 = vld [vmem:[#allocation2 + $0x78] sm:$0xff] }
 0x1d6   : > { %v674_v23 = vpack.c.bf16 %v661_v20, %v660_v19  ;;  %v669_v33 = vld [vmem:[#allocation2 + $0x68] sm:$0xff]  ;;  %v679_v38 = vpack.c.bf16 %v671_v37, %v670_v36 }
 0x1d7   : > { %v678_v35 = vpack.c.bf16 %v669_v33, %v668_v32 }
 0x1d8   : > { %1361 = vmatprep.mubr.bf16.mxu0 %v674_v23 }
 0x1d9   : > { %1362 = vmatmul.mubr.bf16.gmra.mrb[4].mxu0 %v675_v28 }
 0x1da   : > { %1365 = vmatprep.mubr.bf16.mxu0 %v676_v29 }
 0x1e1   : > { %1366 = vmatmul.mubr.bf16.gmra.mrb[8].mxu0 %v677_v34  ;;  %v1244_v34 = vld [vmem:[%s2470_s19] ss:$0 sm:$0xff] }
 0x1e2   : > { %1369 = vmatprep.mubr.bf16.mxu0 %v678_v35 }
 0x1e9   : > { %1370 = vmatmul.mubr.bf16.gmra.mrb[12].mxu0 %v679_v38 }
 0x2a4   : > { %v1359_v42 = vpop.f32.mrb[0].mxu0 }
 0x2a5   : > { %v794_v43 = vadd.f32 %v1359_v42, %v1235_v41  ;;  %v785_v44 = vpop.f32.mrb[1].mxu0 }
 0x2a6   : > { %v786_v45 = vadd.f32 %v1235_v41, %v785_v44  ;;  %v1360_v46 = vpop.f32.mrb[2].mxu0 }
 0x2a7   : > { %v797_v47 = vadd.f32 %v1360_v46, %v1235_v41  ;;  %v788_v48 = vpop.f32.mrb[3].mxu0  ;;  %v850_v50 = vmax.f32 %v794_v43, 0.0 }
 0x2a8   : > { %v789_v49 = vadd.f32 %v1235_v41, %v788_v48  ;;  %v848_v52 = vmax.f32 %v786_v45, 0.0 }
 0x2a9   : > { %v851_v51 = vmax.f32 %v797_v47, 0.0 }
 0x2aa   : > { %v849_v53 = vmax.f32 %v789_v49, 0.0 }
 0x2ab   : > { %v865_v54 = vpack.c.bf16 %v851_v51, %v850_v50 }
 0x2ac   : > { %v1363_v55 = vpop.f32.mrb[4].mxu0  ;;  %v864_v56 = vpack.c.bf16 %v849_v53, %v848_v52 }
 0x2ad   : > { %v810_v57 = vadd.f32 %v1363_v55, %v1235_v41  ;;  %v801_v58 = vpop.f32.mrb[5].mxu0 }
 0x2ae   : > { %v802_v59 = vadd.f32 %v1235_v41, %v801_v58  ;;  %v1364_v60 = vpop.f32.mrb[6].mxu0  ;;  %1389 = vmatprep.mubr.bf16.mxu1 %v864_v56 }
 0x2af   : > { %v813_v61 = vadd.f32 %v1364_v60, %v1235_v41  ;;  %v804_v62 = vpop.f32.mrb[7].mxu0  ;;  %1390 = vmatmul.mubr.bf16.vlgmr.msra.gmra.mrb[0].mxu1 %v865_v54  ;;  %v854_v0 = vmax.f32 %v810_v57, 0.0 }
 0x2b0   : > { %v805_v63 = vadd.f32 %v1235_v41, %v804_v62  ;;  %v852_v2 = vmax.f32 %v802_v59, 0.0 }
 0x2b1   : > { %v855_v1 = vmax.f32 %v813_v61, 0.0 }
 0x2b2   : > { %v853_v3 = vmax.f32 %v805_v63, 0.0 }
 0x2b3   : > { %v867_v4 = vpack.c.bf16 %v855_v1, %v854_v0 }
 0x2b4   : > { %v866_v5 = vpack.c.bf16 %v853_v3, %v852_v2  ;;  %v1367_v6 = vpop.f32.mrb[8].mxu0 }
 0x2b5   : > { %v826_v7 = vadd.f32 %v1367_v6, %v1235_v41  ;;  %v817_v8 = vpop.f32.mrb[9].mxu0 }
 0x2b6   : > { %v818_v9 = vadd.f32 %v1235_v41, %v817_v8  ;;  %v1368_v10 = vpop.f32.mrb[10].mxu0  ;;  %1393 = vmatprep.mubr.bf16.mxu1 %v866_v5 }
 0x2b7   : > { %v829_v11 = vadd.f32 %v1368_v10, %v1235_v41  ;;  %v820_v12 = vpop.f32.mrb[11].mxu0  ;;  %1394 = vmatmul.mubr.bf16.gmra.mrb[4].mxu1 %v867_v4  ;;  %v858_v14 = vmax.f32 %v826_v7, 0.0 }
 0x2b8   : > { %v821_v13 = vadd.f32 %v1235_v41, %v820_v12  ;;  %v856_v16 = vmax.f32 %v818_v9, 0.0 }
 0x2b9   : > { %v859_v15 = vmax.f32 %v829_v11, 0.0 }
 0x2ba   : > { %v857_v17 = vmax.f32 %v821_v13, 0.0 }
 0x2bb   : > { %v869_v18 = vpack.c.bf16 %v859_v15, %v858_v14 }
 0x2bc   : > { %v868_v19 = vpack.c.bf16 %v857_v17, %v856_v16  ;;  %v1371_v20 = vpop.f32.mrb[12].mxu0 }
 0x2bd   : > { %v842_v21 = vadd.f32 %v1371_v20, %v1235_v41  ;;  %v833_v22 = vpop.f32.mrb[13].mxu0 }
 0x2be   : > { %v834_v23 = vadd.f32 %v1235_v41, %v833_v22  ;;  %v1372_v24 = vpop.f32.mrb[14].mxu0  ;;  %1397 = vmatprep.mubr.bf16.mxu1 %v868_v19 }
 0x2bf   : > { %v845_v25 = vadd.f32 %v1372_v24, %v1235_v41  ;;  %v836_v26 = vpop.f32.mrb[15].mxu0  ;;  %1398 = vmatmul.mubr.bf16.gmra.mrb[8].mxu1 %v869_v18  ;;  %v862_v28 = vmax.f32 %v842_v21, 0.0 }
 0x2c0   : > { %v837_v27 = vadd.f32 %v1235_v41, %v836_v26  ;;  %v860_v30 = vmax.f32 %v834_v23, 0.0 }
 0x2c1   : > { %v863_v29 = vmax.f32 %v845_v25, 0.0 }
 0x2c2   : > { %v861_v31 = vmax.f32 %v837_v27, 0.0 }
 0x2c3   : > { %v871_v32 = vpack.c.bf16 %v863_v29, %v862_v28 }
 0x2c4   : > { %v870_v33 = vpack.c.bf16 %v861_v31, %v860_v30 }
 0x2c6   : > { %1401 = vmatprep.mubr.bf16.mxu1 %v870_v33 }
 0x2c7   : > { %1402 = vmatmul.mubr.bf16.gmra.mrb[12].mxu1 %v871_v32 }
 0x382   : > { %v1391_v35 = vpop.f32.mrb[0].mxu1 }
 0x383   : > { %v986_v36 = vadd.f32 %v1391_v35, %v1244_v34  ;;  %v977_v37 = vpop.f32.mrb[1].mxu1 }
 0x384   : > { %v978_v38 = vadd.f32 %v1244_v34, %v977_v37  ;;  %v1392_v39 = vpop.f32.mrb[2].mxu1 }
 0x385   : > { %1042 = vst [vmem:[%s2268_s27 + $0x10] sm:$0xff] %v986_v36  ;;  %v989_v40 = vadd.f32 %v1392_v39, %v1244_v34  ;;  %v980_v41 = vpop.f32.mrb[3].mxu1 }
 0x386   : > { %1040 = vst [vmem:[%s2268_s27] sm:$0xff] %v978_v38  ;;  %v981_v42 = vadd.f32 %v1244_v34, %v980_v41 }
 0x387   : > { %1043 = vst [vmem:[%s2268_s27 + $0x18] sm:$0xff] %v989_v40 }
 0x388   : > { %1041 = vst [vmem:[%s2268_s27 + $0x8] sm:$0xff] %v981_v42 }
 0x38a   : > { %v1395_v43 = vpop.f32.mrb[4].mxu1 }
 0x38b   : > { %v1002_v44 = vadd.f32 %v1395_v43, %v1244_v34  ;;  %v993_v45 = vpop.f32.mrb[5].mxu1 }
 0x38c   : > { %v994_v46 = vadd.f32 %v1244_v34, %v993_v45  ;;  %v1396_v47 = vpop.f32.mrb[6].mxu1 }
 0x38d   : > { %1046 = vst [vmem:[%s2268_s27 + $0x30] sm:$0xff] %v1002_v44  ;;  %v1005_v48 = vadd.f32 %v1396_v47, %v1244_v34  ;;  %v996_v49 = vpop.f32.mrb[7].mxu1 }
 0x38e   : > { %1044 = vst [vmem:[%s2268_s27 + $0x20] sm:$0xff] %v994_v46  ;;  %v997_v50 = vadd.f32 %v1244_v34, %v996_v49 }
 0x38f   : > { %1047 = vst [vmem:[%s2268_s27 + $0x38] sm:$0xff] %v1005_v48 }
 0x390   : > { %1045 = vst [vmem:[%s2268_s27 + $0x28] sm:$0xff] %v997_v50 }
 0x392   : > { %v1399_v51 = vpop.f32.mrb[8].mxu1 }
 0x393   : > { %v1018_v52 = vadd.f32 %v1399_v51, %v1244_v34  ;;  %v1009_v53 = vpop.f32.mrb[9].mxu1 }
 0x394   : > { %v1010_v54 = vadd.f32 %v1244_v34, %v1009_v53  ;;  %v1400_v55 = vpop.f32.mrb[10].mxu1 }
 0x395   : > { %1050 = vst [vmem:[%s2268_s27 + $0x50] sm:$0xff] %v1018_v52  ;;  %v1021_v56 = vadd.f32 %v1400_v55, %v1244_v34  ;;  %v1012_v57 = vpop.f32.mrb[11].mxu1 }
 0x396   : > { %1048 = vst [vmem:[%s2268_s27 + $0x40] sm:$0xff] %v1010_v54  ;;  %v1013_v58 = vadd.f32 %v1244_v34, %v1012_v57 }
 0x397   : > { %1051 = vst [vmem:[%s2268_s27 + $0x58] sm:$0xff] %v1021_v56 }
 0x398   : > { %1049 = vst [vmem:[%s2268_s27 + $0x48] sm:$0xff] %v1013_v58 }
 0x39a   : > { %v1403_v59 = vpop.f32.mrb[12].mxu1 }
 0x39b   : > { %v1034_v60 = vadd.f32 %v1403_v59, %v1244_v34  ;;  %v1025_v61 = vpop.f32.mrb[13].mxu1 }
 0x39c   : > { %v1026_v62 = vadd.f32 %v1244_v34, %v1025_v61  ;;  %v1404_v63 = vpop.f32.mrb[14].mxu1 }
 0x39d   : > { %1054 = vst [vmem:[%s2268_s27 + $0x70] sm:$0xff] %v1034_v60  ;;  %v1037_v0 = vadd.f32 %v1404_v63, %v1244_v34  ;;  %v1028_v1 = vpop.f32.mrb[15].mxu1 }
 0x39e   : > { %1052 = vst [vmem:[%s2268_s27 + $0x60] sm:$0xff] %v1026_v62  ;;  %v1029_v2 = vadd.f32 %v1244_v34, %v1028_v1 }
 0x39f   : > { %1055 = vst [vmem:[%s2268_s27 + $0x78] sm:$0xff] %v1037_v0 }
 0x3a0   : > { %1053 = vst [vmem:[%s2268_s27 + $0x68] sm:$0xff] %v1029_v2 }
 0x3a1 PF: > { %s2471_s30 = sld [smem:[#allocation20_spill]]  ;;  %s2473_s22 = sld [smem:[#allocation23_spill]] }
 0x3a2   : > { %s2474_s2 = sld [smem:[#allocation30_spill]]  ;;  %s1070_s15 = sshll.u32 %s2268_s27, 4  ;;  %s2317_s15 = int_to_ptr.vmem [resolvable:$true] %s1070_s15 }
 0x3a3   : > { %s2321_s3 = scalar_lea.sflag [#allocation5], %s352_s11  ;;  %s1727_s12 = scalar_lea.vmem %s2317_s15, 2048 }
 0x3a4   : > { %p1728_p7 = scmp.ne.s32.totalorder %s2317_s15, %s1727_s12  ;;  %s1895_s17 = smov [#allocation11]  }
 0x3a5   : > { %s1731_s16 = sshll.u32 %s1895_s17, 4  ;;  %s1732_s16 = int_to_ptr.vmem [resolvable:$false] %s1731_s16 }
 0x3a6   : > { %s1733_s7 = scalar_lea.vmem %s1732_s16, 4096  ;;  %p1734_p12 = scmp.lt.s32.totalorder %s2317_s15, %s1732_s16 }
 0x3a7   : > { %s1260_s18 = sshll.u32 %s2471_s30, 11  ;;  %p2475_p0 = scmp.ne.s32.totalorder %s2473_s22, 0 }
 0x3a8   : > { %s2314_s4 = scalar_lea.hbm %s2474_s2, %s1260_s18  ;;  %p1735_p5 = scmp.lt.s32.totalorder %s1733_s7, %s1727_s12 }
 0x3a9   : > { %p1729_p13 = pnand %p1728_p7, %p2475_p0 }
 0x3aa   : > { %p1736_p4 = por %p1735_p5, %p1734_p12 }
 0x3ab   : > { %p1730_p8 = pneg %p1729_p13 }
 0x3ad   : > { %p1737_p9 = pnand %p1736_p4, %p1730_p8 }
 0x3af   : > { %1740 = shalt.err (!%p1737_p9)
}
 0x3b0   : > { %s1741_s11 = scalar_lea.hbm %s2314_s4, 2048  ;;  %s1745_s30 = scalar_lea.hbm %s2474_s2, 4096 }
 0x3b1   : > { %p1742_p6 = scmp.ne.s32.totalorder %s2314_s4, %s1741_s11  ;;  %p1746_p3 = scmp.lt.u32.totalorder %s2314_s4, %s2474_s2 }
 0x3b2   : > { %p1747_p11 = scmp.lt.u32.totalorder %s1745_s30, %s1741_s11  ;;  %p1749_p7 = scmp.lt.u32.totalorder %s1741_s11, %s2314_s4 }
 0x3b3   : > { %p1743_p1 = pnand %p1742_p6, %p2475_p0 }
 0x3b4   : > { %p1748_p10 = por %p1747_p11, %p1746_p3 }
 0x3b5   : > { %p1744_p2 = pneg %p1743_p1 }
 0x3b6   : > { %p1750_p13 = por %p1749_p7, %p1748_p10 }
 0x3b8   : > { %p1751_p8 = pnand %p1750_p13, %p1744_p2 }
 0x3ba   : > { %1754 = shalt.err (!%p1751_p8)
}
 0x3bb   : > { %s1896_s20 = smov 128   ;;  %s1897_s14 = smov 8  }
 0x3bc   : > { %1433 = dma.vmem_to_hbm [thread:$0]  (%p2475_p0), %s2317_s15, 2048, %s2314_s4, %s2321_s3, %s1896_s20, %s1896_s20, %s1897_s14  }
 0x3bd PF: > { %s2476_s12 = sld [smem:[#allocation17_spill]]  ;;  %s2477_s17 = sld [smem:[#allocation24_spill]] }
 0x3be   : > { %p1458_p12 = scmp.ge.s32.totalorder %s1885_s10, 2 }
 0x3c3   : > { %s1085_s16 = sand.u32 1, %s2476_s12   ;;  %p2478_p5 = scmp.ne.s32.totalorder %s2477_s17, 0 }
 0x3c4   : > { %s1086_s7 = scalar_lea.sflag [#allocation5], %s1085_s16 }
 0x3c5   : > { %p1450_p4 = pnand %p1458_p12, %p2478_p5 }
 0x3c7   : > { %1828 = dma.done.wait (!%p1450_p4), %s1086_s7, 2048  }
 0x3c8   : > { %1830 = vsyncadd (!%p1450_p4), %s1086_s7, 4294965248  ;;  %s26_s10 = sadd.s32 1, %s1885_s10   ;;  %s2480_s27 = sld [smem:[#allocation18_spill]] }
 0x3c9   : > { %p2350_p9 = scmp.ge.s32.totalorder %s26_s10, 6   ;;  %s2481_s4 = smov %s2189_s21 }
 0x3ca   : > { %s2482_s15 = sld [smem:[#allocation25_spill]]  ;;  %s2483_s3 = smov %s2502_s24 }
 0x3cb   : > { %s2485_s22 = smov %s1841_s23  ;;  %s2486_s23 = smov %s2132_s5 }
 0x3cc   : > { %s2487_s24 = smov %s1849_s25  ;;  %s2488_s25 = smov %s1853_s26 }
 0x3cd   : > { %s2489_s26 = smov %s2481_s4  ;;  %s2493_s30 = smov %s1877_s8 }
 0x3ce   : > { %s2484_s21 = smov %s2480_s27  ;;  %s2490_s27 = smov %s1861_s28 }
 0x3cf   : > { %s2491_s28 = smov %s1865_s29  ;;  %s2492_s29 = smov %s2135_s6 }
 0x3d0   : > { %s2494_s7 = smov %s1881_s9  ;;  %s2495_s8 = smov %s2482_s15 }
 0x3d1   : > { %s2496_s9 = smov %s2483_s3  ;;  %25 = sbr.rel (!%p2350_p9) target bundleno = 19 (0x13), region = 118 }
 0x3d8   :  { %1091 = vsyncpa [#allocation4], 1 }
 0x3d9   :  { %1093 = vsyncpa [#allocation4 + $0x1], 1 }
 0x3da   :  { %1094 = vsyncpa [#allocation7], 1 }
 0x3db   :  { %1096 = vsyncpa [#allocation7 + $0x1], 1 }
 0x3dc   :  { %1097 = vsyncpa [#allocation10], 1 }
 0x3dd   :  { %1098 = vsyncpa [#allocation5], 1 }
 0x3de   :  { %1100 = vsyncpa [#allocation5 + $0x1], 1 }

</bundles_post_ra>
